<compile_context>
chip_gen: v6e
topology: v6e:2x2x1
jax: 0.10.0
libtpu: 0.0.40
codegen_flags: <defaults>
</compile_context>

<pallas_src>
import functools
import math

import jax
import jax.numpy as jnp
from jax.experimental import pallas as pl
from jax.experimental.pallas import tpu as pltpu


# ---------------------------------------------------------------------------
# Hardware / tiling helpers
# ---------------------------------------------------------------------------
def _vmem_capacity_bytes():
    # Physical VMEM of the attached TPU (128 MiB v5e/v6e, 64 MiB v7x).
    try:
        return int(pltpu.get_tpu_info().vmem_capacity_bytes)
    except Exception:
        return 64 * 2**20  # conservative default (v7x)


def _pass_b_vmem_estimate(tile_n, W, C, M, out_bytes):
    """Rough Pass-B per-core VMEM footprint (double-buffered I/O + temporaries)."""
    bf, f32 = 2, 4
    b = 2 * tile_n * C * bf              # x tile (x2 pipeline buffers)
    b += 2 * 2 * W * C * bf              # top / bottom halo rows
    b += 2 * 2 * M * C * bf              # K and V (plain (M, C), no head blow-up)
    b += 2 * 2 * C * C * bf              # wq, wproj
    b += 2 * C * tile_n * out_bytes      # lane-dense output block
    b += (tile_n + 2 * W) * C * f32      # q_pad scratch
    b += 10 * tile_n * C * f32           # q / attn / hs / conv / y f32 temporaries
    b += 4 * tile_n * M * f32            # per-head scores / p
    return b


def _pick_tile_h(H, W, C, M, out_bytes, budget, target_tokens):
    """Largest tile_h (divides H, lane-aligned output) whose TILE_N is near the
    512-1024 token sweet spot and whose footprint fits the VMEM budget."""
    best = None
    for d in sorted((d for d in range(1, H + 1) if H % d == 0), reverse=True):
        tile_n = d * W
        if not (tile_n % 128 == 0 or d == H):   # lane-dense output constraint
            continue
        if _pass_b_vmem_estimate(tile_n, W, C, M, out_bytes) > budget:
            continue
        best = d
        if tile_n <= target_tokens:
            break
    if best is None:
        # TODO(synk): no aligned row-tile fits the budget; would need an N-axis split.
        best = H
    return best


# ---------------------------------------------------------------------------
# Pass A: pooled kv -> LayerNorm -> K / V projections (scale folded into K)
# ---------------------------------------------------------------------------
def kv_kernel(x_ref, wk_ref, wv_ref, lng_ref, lnb_ref, k_ref, v_ref):
    xs = x_ref[0]                                      # (H, W, C) bf16
    # pooled kv input (f32 accumulation): [row means ; column means]
    x_h = jnp.mean(xs, axis=1, dtype=jnp.float32)      # (H, C)  AdaptiveAvgPool2d((None, 1))
    x_w = jnp.mean(xs, axis=0, dtype=jnp.float32)      # (W, C)  AdaptiveAvgPool2d((1, None))
    kv_in = jnp.concatenate([x_h, x_w], axis=0)        # (M = H + W, C)

    # LayerNorm over channels (eps = 1e-5, torch default)
    mu = jnp.mean(kv_in, axis=-1, keepdims=True)
    var = jnp.mean((kv_in - mu) ** 2, axis=-1, keepdims=True)
    kvn = (kv_in - mu) * jax.lax.rsqrt(var + 1e-5)
    kvn = (kvn * lng_ref[...] + lnb_ref[...]).astype(jnp.bfloat16)

    # split K / V projections; wk already carries the attention scale.
    k_ref[0] = jnp.dot(kvn, wk_ref[...],
                       preferred_element_type=jnp.float32).astype(k_ref.dtype)
    v_ref[0] = jnp.dot(kvn, wv_ref[...],
                       preferred_element_type=jnp.float32).astype(v_ref.dtype)


# ---------------------------------------------------------------------------
# Pass B: q-proj -> per-head attention -> h_sigmoid * dwconv -> proj -> relu
# ---------------------------------------------------------------------------
def attn_kernel(x_ref, xt_ref, xb_ref, k_ref, v_ref,
                wq_ref, wproj_ref, bproj_ref, dww_ref, dwb_ref,
                o_ref, qpad_ref, *, W, num_heads):
    t = pl.program_id(1)
    nt = pl.num_programs(1)

    x = x_ref[0]                                   # (TILE_N, C) bf16
    TILE_N, C = x.shape
    hd = C // num_heads
    wq = wq_ref[...]

    # q projection for the tile and for the one-image-row halo (zeroed at edges)
    q = jnp.dot(x, wq, preferred_element_type=jnp.float32)               # (TILE_N, C)
    q_top = jnp.dot(xt_ref[0], wq, preferred_element_type=jnp.float32)   # (W, C)
    q_bot = jnp.dot(xb_ref[0], wq, preferred_element_type=jnp.float32)   # (W, C)
    q_top = jnp.where(t > 0, q_top, 0.0)
    q_bot = jnp.where(t < nt - 1, q_bot, 0.0)

    # Stage the padded q into VMEM scratch at sublane-aligned offsets
    # (0, W, W + TILE_N, with W % 8 == 0).  No concatenate copy; the stores
    # overlap the attention matmuls below.
    qpad_ref[pl.ds(0, W), :] = q_top
    qpad_ref[pl.ds(W, TILE_N), :] = q
    qpad_ref[pl.ds(W + TILE_N, W), :] = q_bot

    # ---- per-head attention on plain (M, C) K / V -----------------------------
    # (no block-diagonal K/V: avoids num_heads x MXU/VMEM inflation, and gives
    #  an exact per-head softmax max -> no cross-head underflow.)
    q_b = q.astype(jnp.bfloat16)
    k_all = k_ref[0]                               # (M, C) bf16, scale folded in
    v_all = v_ref[0]
    head_outs = []
    for h in range(num_heads):                     # num_heads is small: unrolled
        lo, hi = h * hd, (h + 1) * hd
        s = jax.lax.dot_general(q_b[:, lo:hi], k_all[:, lo:hi],
                                (((1,), (1,)), ((), ())),
                                preferred_element_type=jnp.float32)      # (TILE_N, M)
        m = jnp.max(s, axis=-1, keepdims=True)
        p = jnp.exp(s - m)
        den = jnp.sum(p, axis=-1, keepdims=True)
        pv = jnp.dot(p.astype(jnp.bfloat16), v_all[:, lo:hi],
                     preferred_element_type=jnp.float32)                 # (TILE_N, hd)
        head_outs.append(pv * pl.reciprocal(den, approx=True))
    attn_out = head_outs[0] if num_heads == 1 else jnp.concatenate(head_outs, axis=-1)

    # h_sigmoid: relu6(x + 3) / 6
    hs = jnp.clip(attn_out + 3.0, 0.0, 6.0) * (1.0 / 6.0)

    # ---- depthwise 3x3 conv (padding=1) on q -----------------------------------
    # 3 sublane-aligned dy slices of the scratch; dx = +-1 via pltpu.roll (XLU)
    # plus hoisted column masks (wrapped rows land only on masked columns).
    col = jax.lax.broadcasted_iota(jnp.int32, (TILE_N, 1), 0) % W
    mask_l = (col > 0).astype(jnp.float32)
    mask_r = (col < W - 1).astype(jnp.float32)
    conv = jnp.zeros((TILE_N, C), jnp.float32)
    for dy in (-1, 0, 1):
        s0 = q if dy == 0 else qpad_ref[pl.ds(W + dy * W, TILE_N), :]
        for dx in (-1, 0, 1):
            tap = (dy + 1) * 3 + (dx + 1)
            if dx == 0:
                sd = s0
            else:
                sd = pltpu.roll(s0, (-dx) % TILE_N, 0)   # sd[n] = s0[n + dx]
                sd = sd * (mask_l if dx == -1 else mask_r)
            conv = conv + sd * dww_ref[tap:tap + 1, :]
    lf = conv + dwb_ref[...]

    # ---- gate, output projection, residual, relu --------------------------------
    y = hs * lf
    y = jnp.dot(y.astype(jnp.bfloat16), wproj_ref[...],
                preferred_element_type=jnp.float32) + bproj_ref[...]
    y = jnp.maximum(y + x.astype(jnp.float32), 0.0)

    # lane-dense (C, TILE_N) store -> wrapper's NCHW reshape is free.
    o_ref[0] = y.T.astype(o_ref.dtype)


# ---------------------------------------------------------------------------
# Wrapper
# ---------------------------------------------------------------------------
def attention_forward(x, params, H, W, num_heads, tile_h=None, out_dtype=None):
    B, N, C = x.shape
    assert N == H * W and C % num_heads == 0
    hd = C // num_heads
    M = H + W
    out_dtype = x.dtype if out_dtype is None else out_dtype   # bf16 halves writeback (v5e)
    out_bytes = jnp.dtype(out_dtype).itemsize

    # per-generation VMEM budget (25% headroom below physical capacity)
    vmem_cap = _vmem_capacity_bytes()
    vmem_budget = int(vmem_cap * 3 // 4)
    # TODO(synk): on v7x both TensorCores hold their own copy of the resident
    # weights / K / V; treated as covered by the 25% headroom here.

    if tile_h is None:
        target_tokens = 1024 if vmem_cap >= (96 << 20) else 512
        tile_h = _pick_tile_h(H, W, C, M, out_bytes, vmem_budget, target_tokens)
    assert H % tile_h == 0
    TILE_N = tile_h * W
    n_tiles = H // tile_h
    # halo row blocks need W % 8 == 0; lane-dense output needs TILE_N % 128 == 0
    # (or a single tile).  TODO(synk): generalize if ever violated.
    assert W % 8 == 0
    assert TILE_N % 128 == 0 or n_tiles == 1

    # bf16 operands on every MXU matmul (f32 accumulation in-kernel).
    x_bf = x.astype(jnp.bfloat16)
    x_img = x_bf.reshape(B, H, W, C)               # free reshape (contiguous)

    scale = hd ** -0.5
    wq_b = params["wq"].astype(jnp.bfloat16)
    wk_b = (params["wk"] * scale).astype(jnp.bfloat16)   # fold attention scale into K
    wv_b = params["wv"].astype(jnp.bfloat16)
    wproj_b = params["wproj"].astype(jnp.bfloat16)

    # ---- Pass A: per-batch pooled K / V (tiny streaming pass) -------------------
    # TODO(synk): for very large images this pass could be H-tiled with running
    # mean accumulators; kept per-batch with a raised VMEM limit here.
    passa_need = (2 * H * W * C * 2          # double-buffered bf16 image block
                  + H * W * C * 4            # possible f32 upcast of the image
                  + 12 * M * C * 4           # kv / K / V temporaries
                  + 4 * C * C * 2            # wk, wv
                  + (4 << 20))               # slack
    passa_limit = int(min(vmem_budget, max(20 << 20, passa_need)))
    k_sc, v_sc = pl.pallas_call(
        kv_kernel,
        out_shape=(jax.ShapeDtypeStruct((B, M, C), jnp.bfloat16),
                   jax.ShapeDtypeStruct((B, M, C), jnp.bfloat16)),
        grid_spec=pltpu.PrefetchScalarGridSpec(
            num_scalar_prefetch=0,
            grid=(B,),
            in_specs=[
                pl.BlockSpec((1, H, W, C), lambda b: (b, 0, 0, 0)),   # image view
                pl.BlockSpec((C, C), lambda b: (0, 0)),               # wk (scaled)
                pl.BlockSpec((C, C), lambda b: (0, 0)),               # wv
                pl.BlockSpec((1, C), lambda b: (0, 0)),               # LN gamma
                pl.BlockSpec((1, C), lambda b: (0, 0)),               # LN beta
            ],
            out_specs=[
                pl.BlockSpec((1, M, C), lambda b: (b, 0, 0)),         # K (scaled)
                pl.BlockSpec((1, M, C), lambda b: (b, 0, 0)),         # V
            ],
        ),
        compiler_params=pltpu.CompilerParams(
            dimension_semantics=("parallel",),
            vmem_limit_bytes=passa_limit),
    )(x_img, wk_b, wv_b, params["ln_g"], params["ln_b"])

    # ---- Pass B: main kernel over (batch, N-tile) grid ---------------------------
    attn_kern = functools.partial(attn_kernel, W=W, num_heads=num_heads)
    passb_limit = int(min(vmem_budget,
                          max(32 << 20,
                              2 * _pass_b_vmem_estimate(TILE_N, W, C, M, out_bytes))))
    out = pl.pallas_call(
        attn_kern,
        out_shape=jax.ShapeDtypeStruct((B, C, N), out_dtype),
        grid_spec=pltpu.PrefetchScalarGridSpec(
            num_scalar_prefetch=0,
            grid=(B, n_tiles),
            in_specs=[
                pl.BlockSpec((1, TILE_N, C), lambda b, t: (b, t, 0)),   # x tile
                pl.BlockSpec((1, W, C),                                  # top halo row
                             lambda b, t: (b, jnp.maximum(t * tile_h - 1, 0), 0)),
                pl.BlockSpec((1, W, C),                                  # bottom halo row
                             lambda b, t: (b, jnp.minimum((t + 1) * tile_h, H - 1), 0)),
                pl.BlockSpec((1, M, C), lambda b, t: (b, 0, 0)),        # K (scaled)
                pl.BlockSpec((1, M, C), lambda b, t: (b, 0, 0)),        # V
                pl.BlockSpec((C, C), lambda b, t: (0, 0)),              # Wq^T
                pl.BlockSpec((C, C), lambda b, t: (0, 0)),              # Wproj^T
                pl.BlockSpec((1, C), lambda b, t: (0, 0)),              # proj bias
                pl.BlockSpec((9, C), lambda b, t: (0, 0)),              # dwconv weights
                pl.BlockSpec((1, C), lambda b, t: (0, 0)),              # dwconv bias
            ],
            out_specs=pl.BlockSpec((1, C, TILE_N), lambda b, t: (b, 0, t)),
            scratch_shapes=[pltpu.VMEM((TILE_N + 2 * W, C), jnp.float32)],
        ),
        compiler_params=pltpu.CompilerParams(
            dimension_semantics=("parallel", "parallel"),
            vmem_limit_bytes=passb_limit),
    )(x_bf, x_bf, x_bf, k_sc, v_sc, wq_b, wproj_b,
      params["bproj"], params["dww"], params["dwb"])

    # kernel already produced (B, C, N) -> NCHW is just a free reshape
    return out.reshape(B, C, H, W)


# ---------------------------------------------------------------------------
# Pure-JAX f32 reference of the PyTorch forward (for verification)
# ---------------------------------------------------------------------------
def reference(x, params, H, W, num_heads):
    B, N, C = x.shape
    hd = C // num_heads
    scale = hd ** -0.5
    q_ = x @ params["wq"]                                             # (B, N, C)
    x_img = x.transpose(0, 2, 1).reshape(B, C, H, W)
    x_h = x_img.mean(axis=3)                                          # (B, C, H)
    x_w = x_img.mean(axis=2)                                          # (B, C, W)
    kv_in = jnp.concatenate([x_h, x_w], axis=2).transpose(0, 2, 1)    # (B, H+W, C)
    mu = kv_in.mean(-1, keepdims=True)
    var = ((kv_in - mu) ** 2).mean(-1, keepdims=True)
    kvn = (kv_in - mu) / jnp.sqrt(var + 1e-5) * params["ln_g"][0] + params["ln_b"][0]
    k = kvn @ params["wk"]
    v = kvn @ params["wv"]
    k = k.reshape(B, -1, num_heads, hd).transpose(0, 2, 1, 3)
    v = v.reshape(B, -1, num_heads, hd).transpose(0, 2, 1, 3)
    q = q_.reshape(B, N, num_heads, hd).transpose(0, 2, 1, 3)
    attn = jnp.einsum("bhnd,bhmd->bhnm", q, k) * scale
    attn = jax.nn.softmax(attn, axis=-1)
    out = jnp.einsum("bhnm,bhmd->bhnd", attn, v).transpose(0, 2, 1, 3).reshape(B, N, C)
    hs = jnp.clip(out + 3.0, 0.0, 6.0) / 6.0
    q_img = q_.transpose(0, 2, 1).reshape(B, C, H, W)
    w4 = params["dww"].T.reshape(C, 3, 3)[:, None, :, :]              # (C, 1, 3, 3)
    conv = jax.lax.conv_general_dilated(q_img, w4, (1, 1), "SAME",
                                        feature_group_count=C)
    conv = conv + params["dwb"][0][None, :, None, None]
    lf = conv.reshape(B, C, N).transpose(0, 2, 1)
    y = hs * lf
    y = y @ params["wproj"] + params["bproj"][0]
    y = jnp.maximum(y + x, 0.0)
    return y.reshape(B, H, W, C).transpose(0, 3, 1, 2)


if __name__ == "__main__":
    B, C, H, W = 2, 32, 16, 16
    num_heads = 2
    N = H * W

    key = jax.random.PRNGKey(0)
    ks = jax.random.split(key, 10)

    x = jax.random.normal(ks[0], (B, N, C), jnp.float32)

    # parameter shapes follow the module's __init__ ((in, out) = W^T layouts)
    wq = jax.random.normal(ks[1], (C, C), jnp.float32) * 0.02
    wk = jax.random.normal(ks[2], (C, C), jnp.float32) * 0.02
    wv = jax.random.normal(ks[3], (C, C), jnp.float32) * 0.02
    wproj = jax.random.normal(ks[4], (C, C), jnp.float32) * 0.02
    bproj = jax.random.normal(ks[5], (1, C), jnp.float32) * 0.02
    ln_g = 1.0 + 0.1 * jax.random.normal(ks[6], (1, C), jnp.float32)
    ln_b = 0.1 * jax.random.normal(ks[7], (1, C), jnp.float32)
    dw = jax.random.normal(ks[8], (C, 3, 3), jnp.float32) * math.sqrt(2.0 / 9.0)
    dww = dw.reshape(C, 9).T                                          # (9, C), row = ky*3+kx
    dwb = 0.02 * jax.random.normal(ks[9], (1, C), jnp.float32)

    params = dict(wq=wq, wk=wk, wv=wv, wproj=wproj, bproj=bproj,
                  ln_g=ln_g, ln_b=ln_b, dww=dww, dwb=dwb)

    ref = reference(x, params, H, W, num_heads)

    # 1) explicit tile_h=8 -> 2 N-tiles per batch: exercises the halo / roll path.
    out_tiled = jax.block_until_ready(
        attention_forward(x, params, H, W, num_heads, tile_h=8))
    # 2) auto tile_h from the VMEM budget (single tile at this toy size).
    out_auto = jax.block_until_ready(
        attention_forward(x, params, H, W, num_heads))

    assert out_tiled.shape == (B, C, H, W), out_tiled.shape
    assert out_auto.shape == (B, C, H, W), out_auto.shape
    err = max(float(jnp.max(jnp.abs(out_tiled - ref))),
              float(jnp.max(jnp.abs(out_auto - ref))))
    if err > 5e-2:   # bf16 matmul path vs f32 reference
        raise SystemExit(f"max abs error too large: {err}")

    print("KERNEL_OK")
</pallas_src>

<mosaic_0001>
module attributes {stable_mosaic.version = 11 : i64} {
  func.func @kv_kernel(%arg0: i32, %arg1: memref<1x16x16x32xbf16, #tpu.memory_space<vmem>>, %arg2: memref<32x32xbf16, #tpu.memory_space<vmem>>, %arg3: memref<32x32xbf16, #tpu.memory_space<vmem>>, %arg4: memref<1x32xf32, #tpu.memory_space<vmem>>, %arg5: memref<1x32xf32, #tpu.memory_space<vmem>>, %arg6: memref<1x32x32xbf16, #tpu.memory_space<vmem>>, %arg7: memref<1x32x32xbf16, #tpu.memory_space<vmem>>) attributes {dimension_semantics = [#tpu.dimension_semantics<parallel>], iteration_bounds = array<i64: 2>, scalar_prefetch = 0 : i64, scratch_operands = 0 : i64, tpu.core_type = #tpu.core_type<tc>, window_params = [{transform_indices = @transform_0, window_bounds = array<i64: 1, 16, 16, 32>}, {pipeline_mode = #tpu.pipeline_mode<synchronous>, transform_indices = @transform_1, window_bounds = array<i64: 32, 32>}, {pipeline_mode = #tpu.pipeline_mode<synchronous>, transform_indices = @transform_2, window_bounds = array<i64: 32, 32>}, {pipeline_mode = #tpu.pipeline_mode<synchronous>, transform_indices = @transform_3, window_bounds = array<i64: 1, 32>}, {pipeline_mode = #tpu.pipeline_mode<synchronous>, transform_indices = @transform_4, window_bounds = array<i64: 1, 32>}, {transform_indices = @transform_5, window_bounds = array<i64: 1, 32, 32>}, {transform_indices = @transform_6, window_bounds = array<i64: 1, 32, 32>}]} {
    %c0 = arith.constant 0 : index
    %c0_0 = arith.constant 0 : index
    %c0_1 = arith.constant 0 : index
    %c0_2 = arith.constant 0 : index
    %0 = vector.load %arg1[%c0, %c0_0, %c0_1, %c0_2] : memref<1x16x16x32xbf16, #tpu.memory_space<vmem>>, vector<1x16x16x32xbf16>
    %1 = vector.shape_cast %0 : vector<1x16x16x32xbf16> to vector<16x16x32xbf16>
    %2 = arith.extf %1 : vector<16x16x32xbf16> to vector<16x16x32xf32>
    %cst = arith.constant dense<0.000000e+00> : vector<16x32xf32>
    %3 = vector.multi_reduction <add>, %2, %cst [1] : vector<16x16x32xf32> to vector<16x32xf32>
    %cst_3 = arith.constant 1.600000e+01 : f32
    %4 = vector.broadcast %cst_3 : f32 to vector<16x32xf32>
    %5 = arith.divf %3, %4 : vector<16x32xf32>
    %6 = arith.extf %1 : vector<16x16x32xbf16> to vector<16x16x32xf32>
    %cst_4 = arith.constant dense<0.000000e+00> : vector<16x32xf32>
    %7 = vector.multi_reduction <add>, %6, %cst_4 [0] : vector<16x16x32xf32> to vector<16x32xf32>
    %cst_5 = arith.constant 1.600000e+01 : f32
    %8 = vector.broadcast %cst_5 : f32 to vector<16x32xf32>
    %9 = arith.divf %7, %8 : vector<16x32xf32>
    %10 = tpu.concatenate %5, %9 in 0 : vector<16x32xf32>, vector<16x32xf32> -> vector<32x32xf32>
    %cst_6 = arith.constant dense<0.000000e+00> : vector<32xf32>
    %11 = vector.multi_reduction <add>, %10, %cst_6 [1] : vector<32x32xf32> to vector<32xf32>
    %12 = vector.shape_cast %11 : vector<32xf32> to vector<32x1xf32>
    %cst_7 = arith.constant 3.200000e+01 : f32
    %13 = vector.broadcast %cst_7 : f32 to vector<32x1xf32>
    %14 = arith.divf %12, %13 : vector<32x1xf32>
    %15 = vector.broadcast %14 : vector<32x1xf32> to vector<32x32xf32>
    %16 = arith.subf %10, %15 : vector<32x32xf32>
    %17 = arith.mulf %16, %16 : vector<32x32xf32>
    %cst_8 = arith.constant dense<0.000000e+00> : vector<32xf32>
    %18 = vector.multi_reduction <add>, %17, %cst_8 [1] : vector<32x32xf32> to vector<32xf32>
    %19 = vector.shape_cast %18 : vector<32xf32> to vector<32x1xf32>
    %cst_9 = arith.constant 3.200000e+01 : f32
    %20 = vector.broadcast %cst_9 : f32 to vector<32x1xf32>
    %21 = arith.divf %19, %20 : vector<32x1xf32>
    %22 = vector.broadcast %14 : vector<32x1xf32> to vector<32x32xf32>
    %23 = arith.subf %10, %22 : vector<32x32xf32>
    %cst_10 = arith.constant 9.99999974E-6 : f32
    %24 = vector.broadcast %cst_10 : f32 to vector<32x1xf32>
    %25 = arith.addf %21, %24 : vector<32x1xf32>
    %26 = math.rsqrt %25 : vector<32x1xf32>
    %27 = vector.broadcast %26 : vector<32x1xf32> to vector<32x32xf32>
    %28 = arith.mulf %23, %27 : vector<32x32xf32>
    %c0_11 = arith.constant 0 : index
    %c0_12 = arith.constant 0 : index
    %29 = vector.load %arg4[%c0_11, %c0_12] : memref<1x32xf32, #tpu.memory_space<vmem>>, vector<1x32xf32>
    %30 = vector.broadcast %29 : vector<1x32xf32> to vector<32x32xf32>
    %31 = arith.mulf %28, %30 : vector<32x32xf32>
    %c0_13 = arith.constant 0 : index
    %c0_14 = arith.constant 0 : index
    %32 = vector.load %arg5[%c0_13, %c0_14] : memref<1x32xf32, #tpu.memory_space<vmem>>, vector<1x32xf32>
    %33 = vector.broadcast %32 : vector<1x32xf32> to vector<32x32xf32>
    %34 = arith.addf %31, %33 : vector<32x32xf32>
    %35 = arith.truncf %34 : vector<32x32xf32> to vector<32x32xbf16>
    %c0_15 = arith.constant 0 : index
    %c0_16 = arith.constant 0 : index
    %36 = vector.load %arg2[%c0_15, %c0_16] : memref<32x32xbf16, #tpu.memory_space<vmem>>, vector<32x32xbf16>
    %cst_17 = arith.constant dense<0.000000e+00> : vector<32x32xf32>
    %37 = tpu.matmul %35, %36, %cst_17 {dimension_numbers = #tpu.dot_dimension_numbers<[1], [0], [0], [1], [0, 0, 1, 1], [], []>} : vector<32x32xbf16>, vector<32x32xbf16>, vector<32x32xf32> -> vector<32x32xf32>
    %38 = arith.truncf %37 : vector<32x32xf32> to vector<32x32xbf16>
    %c0_18 = arith.constant 0 : index
    %c0_19 = arith.constant 0 : index
    %c0_20 = arith.constant 0 : index
    %39 = vector.load %arg6[%c0_18, %c0_19, %c0_20] : memref<1x32x32xbf16, #tpu.memory_space<vmem>>, vector<1x32x32xbf16>
    %40 = vector.shape_cast %39 : vector<1x32x32xbf16> to vector<32x32xbf16>
    %41 = vector.shape_cast %38 : vector<32x32xbf16> to vector<1x32x32xbf16>
    tpu.vector_store %arg6[%c0_18, %c0_19, %c0_20], %41 {strides = array<i32>} : memref<1x32x32xbf16, #tpu.memory_space<vmem>>, vector<1x32x32xbf16>,
    %c0_21 = arith.constant 0 : index
    %c0_22 = arith.constant 0 : index
    %42 = vector.load %arg3[%c0_21, %c0_22] : memref<32x32xbf16, #tpu.memory_space<vmem>>, vector<32x32xbf16>
    %cst_23 = arith.constant dense<0.000000e+00> : vector<32x32xf32>
    %43 = tpu.matmul %35, %42, %cst_23 {dimension_numbers = #tpu.dot_dimension_numbers<[1], [0], [0], [1], [0, 0, 1, 1], [], []>} : vector<32x32xbf16>, vector<32x32xbf16>, vector<32x32xf32> -> vector<32x32xf32>
    %44 = arith.truncf %43 : vector<32x32xf32> to vector<32x32xbf16>
    %c0_24 = arith.constant 0 : index
    %c0_25 = arith.constant 0 : index
    %c0_26 = arith.constant 0 : index
    %45 = vector.load %arg7[%c0_24, %c0_25, %c0_26] : memref<1x32x32xbf16, #tpu.memory_space<vmem>>, vector<1x32x32xbf16>
    %46 = vector.shape_cast %45 : vector<1x32x32xbf16> to vector<32x32xbf16>
    %47 = vector.shape_cast %44 : vector<32x32xbf16> to vector<1x32x32xbf16>
    tpu.vector_store %arg7[%c0_24, %c0_25, %c0_26], %47 {strides = array<i32>} : memref<1x32x32xbf16, #tpu.memory_space<vmem>>, vector<1x32x32xbf16>,
    return
  }
  func.func @transform_0(%arg0: i32) -> (i32, i32, i32, i32) {
    %c0_i32 = arith.constant 0 : i32
    %c0_i32_0 = arith.constant 0 : i32
    %c0_i32_1 = arith.constant 0 : i32
    %c0_i32_2 = arith.constant 0 : i32
    return %arg0, %c0_i32, %c0_i32_0, %c0_i32_1 : i32, i32, i32, i32
  }
  func.func @transform_1(%arg0: i32) -> (i32, i32) {
    %c0_i32 = arith.constant 0 : i32
    %c0_i32_0 = arith.constant 0 : i32
    %c0_i32_1 = arith.constant 0 : i32
    return %c0_i32, %c0_i32_0 : i32, i32
  }
  func.func @transform_2(%arg0: i32) -> (i32, i32) {
    %c0_i32 = arith.constant 0 : i32
    %c0_i32_0 = arith.constant 0 : i32
    %c0_i32_1 = arith.constant 0 : i32
    return %c0_i32, %c0_i32_0 : i32, i32
  }
  func.func @transform_3(%arg0: i32) -> (i32, i32) {
    %c0_i32 = arith.constant 0 : i32
    %c0_i32_0 = arith.constant 0 : i32
    %c0_i32_1 = arith.constant 0 : i32
    return %c0_i32, %c0_i32_0 : i32, i32
  }
  func.func @transform_4(%arg0: i32) -> (i32, i32) {
    %c0_i32 = arith.constant 0 : i32
    %c0_i32_0 = arith.constant 0 : i32
    %c0_i32_1 = arith.constant 0 : i32
    return %c0_i32, %c0_i32_0 : i32, i32
  }
  func.func @transform_5(%arg0: i32) -> (i32, i32, i32) {
    %c0_i32 = arith.constant 0 : i32
    %c0_i32_0 = arith.constant 0 : i32
    %c0_i32_1 = arith.constant 0 : i32
    return %arg0, %c0_i32, %c0_i32_0 : i32, i32, i32
  }
  func.func @transform_6(%arg0: i32) -> (i32, i32, i32) {
    %c0_i32 = arith.constant 0 : i32
    %c0_i32_0 = arith.constant 0 : i32
    %c0_i32_1 = arith.constant 0 : i32
    return %arg0, %c0_i32, %c0_i32_0 : i32, i32, i32
  }
}

</mosaic_0001>

<bundles_post_ra>
// kernel: tpu_custom_call.1
= control target key start
LH: loop header
LB: loop body
LE: loop exit
PB: predicated region body
PF: predicated region fallthrough
CT: control target
= control target key end

     0   :  { %12 = vsyncpa [#allocation3], 0  ;;  %s1924_s0 = inlined_call_operand.hbm [shape: bf16[2,16,16,32], index: 0, kind: input, shape index: {}]   ;;  %s1925_s1 = inlined_call_operand.hbm [shape: bf16[32,32], index: 1, kind: input, shape index: {}]   ;;  %s1926_s2 = inlined_call_operand.hbm [shape: bf16[32,32], index: 2, kind: input, shape index: {}]   ;;  %s1927_s3 = inlined_call_operand.vmem [shape: f32[1,32], index: 3, kind: input, shape index: {}]   ;;  %s1928_s4 = inlined_call_operand.vmem [shape: f32[1,32], index: 4, kind: input, shape index: {}]   ;;  %s1929_s5 = inlined_call_operand.hbm [shape: bf16[2,32,32], index: 5, kind: output, shape index: {0}]   ;;  %s1930_s6 = inlined_call_operand.hbm [shape: bf16[2,32,32], index: 6, kind: output, shape index: {1}]  }
   0x1   :  { %14 = vsyncpa [#allocation3 + $0x1], 0 }
   0x2   :  { %15 = vsyncpa [#allocation6], 0 }
   0x3   :  { %16 = vsyncpa [#allocation4], 0 }
   0x4   :  { %18 = vsyncpa [#allocation4 + $0x1], 0 }
   0x5   :  { %19 = vsyncpa [#allocation10], 0 }
   0x6   :  { %21 = vsyncpa [#allocation10 + $0x1], 0  ;;  %s1487_s21 = smov 0   ;;  %s1489_s22 = smov 0  }
   0x7   :  { %s1491_s23 = smov 0   ;;  %s1493_s24 = smov 0  }
   0x8 LB: > { %s1508_s25 = sadd.s32 4294967295, %s1441_s24   ;;  %s1021_s26 = sadd.s32 4294967294, %s1441_s24   ;;  %s1441_s24 = sphi %s1493_s24, %s1955_s24   ;;  %s1437_s23 = sphi %s1491_s23, %s1954_s23   ;;  %s1433_s22 = sphi %s1489_s22, %s1953_s22   ;;  %s1429_s21 = sphi %s1487_s21, %s1952_s21  }
   0x9   : > { %p47_p0 = scmp.ne.s32.totalorder %s1433_s22, %s1429_s21  ;;  %p1931_p1 = scmp.eq.s32.totalorder %s1508_s25, 0 }
   0xa   : > { %p155_p2 = scmp.eq.s32.totalorder %s1508_s25, 1  ;;  %p161_p3 = scmp.eq.s32.totalorder %s1021_s26, 1 }
   0xb   : > { %p1517_p4 = por %p1931_p1, %p47_p0  ;;  %p1022_p5 = scmp.ge.s32.totalorder %s1441_s24, 1 }
   0xc   : > { %p1522_p6 = por %p161_p3, %p47_p0  ;;  %p194_p7 = scmp.lt.s32.totalorder %s1441_s24, 3 }
   0xd   : > { %s1937_s27 = scalar_select %p1517_p4, 1, 0 }
   0xe   : > { %s1938_s28 = scalar_select %p1522_p6, 1, 0 }
   0xf   : > { %p1527_p8 = pnand %p1022_p5, %p194_p7  ;;  %s1443_s30 = smov [#allocation5]  }
  0x10   : > { %s206_s7 = sshll.u32 %s1443_s30, 4  ;;  %s1444_s9 = smov [#allocation7]   ;;  %s207_s7 = int_to_ptr.vmem [resolvable:$true] %s206_s7 }
  0x11   : > { %s1939_s29 = scalar_select %p1527_p8, 1, 0 }
  0x12   : > { %p1189_p9 = pneg %p1527_p8  ;;  %s219_s10 = sshll.u32 %s1444_s9, 4  ;;  %s220_s10 = int_to_ptr.vmem [resolvable:$true] %s219_s10 }
  0x13   : > { %s1274_s11 = scalar_lea.vmem %s207_s7, 256  ;;  %p1282_p5 = scmp.lt.s32.totalorder %s207_s7, %s207_s7 }
  0x14   : > { %p1536_p11 = pnand %p1189_p9, %p1931_p1  ;;  %p1275_p13 = scmp.ne.s32.totalorder %s207_s7, %s1274_s11 }
  0x15   : > { %p1283_p7 = scmp.lt.s32.totalorder %s1274_s11, %s1274_s11 }
  0x16   : > { %p1265_p12 = pneg %p1536_p11 }
  0x17   : > { %p1284_p10 = por %p1283_p7, %p1282_p5 }
  0x18   : > { %p1277_p0 = pnand %p1275_p13, %p1265_p12 }
  0x1a   : > { %p1278_p3 = pneg %p1277_p0 }
  0x1c   : > { %p1285_p9 = pnand %p1284_p10, %p1278_p3 }
  0x1e   : > { %1288 = shalt.err (!%p1285_p9)
}
  0x1f   : > { %s1932_s12 = smov 64   ;;  %s1933_s13 = smov 4  }
  0x20   : > { %1192 = dma.hbm_to_vmem [thread:$0]  (!%p1536_p11), %s1925_s1, 256, %s207_s7, [#allocation6], %s1932_s12, %s1932_s12, %s1933_s13  }
  0x21   : > { %s1300_s16 = scalar_lea.vmem %s220_s10, 256  ;;  %p1308_p10 = scmp.lt.s32.totalorder %s220_s10, %s220_s10 }
  0x22   : > { %p1301_p13 = scmp.ne.s32.totalorder %s220_s10, %s1300_s16  ;;  %p1309_p3 = scmp.lt.s32.totalorder %s1300_s16, %s1300_s16 }
  0x24   : > { %p1303_p0 = pnand %p1301_p13, %p1265_p12  ;;  %p1310_p7 = por %p1309_p3, %p1308_p10 }
  0x26   : > { %p1304_p5 = pneg %p1303_p0 }
  0x28   : > { %p1311_p9 = pnand %p1310_p7, %p1304_p5 }
  0x2a   : > { %1314 = shalt.err (!%p1311_p9)
}
  0x2b   : > { %1195 = dma.hbm_to_vmem [thread:$0]  (!%p1536_p11), %s1926_s2, 256, %s220_s10, [#allocation6], %s1932_s12, %s1932_s12, %s1933_s13  }
  0x2c   : > { %s1565_s19 = sadd.s32 1, %s1441_s24   ;;  %s34_s20 = sadd.s32 1, %s1437_s23 }
  0x2d   : > { %s31_s26 = ssub.s32 %s1441_s24, %s1565_s19  ;;  %p41_p12 = scmp.ne.s32.totalorder %s1437_s23, %s1433_s22 }
  0x2e   : > { %p32_p13 = scmp.eq.s32.totalorder %s31_s26, 0  ;;  %p42_p0 = scmp.eq.s32.totalorder %s1441_s24, 0 }
  0x2f   : > { %p1575_p5 = por %p155_p2, %p41_p12  ;;  %p1209_p10 = scmp.lt.s32.totalorder %s1441_s24, 2 }
  0x30   : > { %s1581_s7 = scalar_select %p32_p13, %s1437_s23, %s34_s20  }
  0x31   : > { %s1941_s30 = scalar_select %p1575_p5, 1, 0 }
  0x32   : > { %p43_p3 = por %p42_p0, %p41_p12  ;;  %s239_s8 = sand.u32 1, %s1437_s23  }
  0x33   : > { %s1026_s9 = sshll.u32 %s239_s8, 7  ;;  %s1061_s10 = sshll.u32 %s1441_s24, 11 }
  0x34   : > { %s1588_s15 = scalar_lea.hbm %s1924_s0, %s1061_s10  ;;  %s243_s16 = scalar_lea.vmem [#allocation2], %s1026_s9 }
  0x35   : > { %s250_s17 = sshll.u32 %s243_s16, 4  ;;  %p1592_p2 = pnand %p1209_p10, %p43_p3  ;;  %s1590_s17 = int_to_ptr.vmem [resolvable:$true] %s250_s17 }
  0x36   : > { %s1596_s20 = scalar_lea.sflag [#allocation3], %s239_s8  ;;  %s1315_s26 = scalar_lea.hbm %s1588_s15, 2048 }
  0x37   : > { %p1316_p11 = scmp.ne.s32.totalorder %s1588_s15, %s1315_s26  ;;  %p1317_p7 = pneg %p1592_p2 }
  0x38   : > { %s1320_s9 = scalar_lea.hbm %s1924_s0, 4096  ;;  %p1321_p13 = scmp.lt.s32.totalorder %s1588_s15, %s1924_s0 }
  0x39   : > { %p1318_p9 = pnand %p1317_p7, %p1316_p11  ;;  %p1322_p0 = scmp.lt.s32.totalorder %s1320_s9, %s1315_s26 }
  0x3b   : > { %p1319_p12 = pneg %p1318_p9  ;;  %p1323_p10 = por %p1322_p0, %p1321_p13 }
  0x3d   : > { %p1324_p3 = pnand %p1323_p10, %p1319_p12 }
  0x3f   : > { %1327 = shalt.err (!%p1324_p3)
}
  0x40   : > { %s1328_s8 = scalar_lea.vmem %s1590_s17, 2048  ;;  %s1447_s12 = smov [#allocation2]  }
  0x41   : > { %p1329_p1 = scmp.ne.s32.totalorder %s1590_s17, %s1328_s8  ;;  %s1333_s13 = sshll.u32 %s1447_s12, 4  ;;  %s1334_s13 = int_to_ptr.vmem [resolvable:$false] %s1333_s13 }
  0x42   : > { %s1335_s10 = scalar_lea.vmem %s1334_s13, 4096  ;;  %p1336_p9 = scmp.lt.s32.totalorder %s1590_s17, %s1334_s13 }
  0x43   : > { %p1331_p6 = pnand %p1329_p1, %p1317_p7  ;;  %p1337_p5 = scmp.lt.s32.totalorder %s1335_s10, %s1328_s8 }
  0x45   : > { %p1332_p11 = pneg %p1331_p6  ;;  %p1338_p4 = por %p1337_p5, %p1336_p9 }
  0x47   : > { %p1339_p8 = pnand %p1338_p4, %p1332_p11 }
  0x49   : > { %1342 = shalt.err (!%p1339_p8)
}
  0x4a   : > { %s1943_s26 = smov 4   ;;  %s1944_s11 = smov 64  }
  0x4b   : > { %1199 = dma.hbm_to_vmem [thread:$0]  (!%p1592_p2), %s1588_s15, 2048, %s1590_s17, %s1596_s20, %s1944_s11, %s1944_s11, %s1943_s26  }
  0x4c   : > { %p1945_p1 = scmp.ne.s32.totalorder %s1939_s29, 0 }
  0x4d   : > { %s1623_s12 = sand.u32 (!%p1945_p1), 1, %s1433_s22   ;;  %p1946_p4 = scmp.ne.s32.totalorder (!%p1945_p1), %s1937_s27, 0 }
  0x4e   : > { %262 = sbr.rel (%p1945_p1) target bundleno = 706 (0x2c2), region = 40  ;;  %s1030_s13 = sshll.u32 (!%p1945_p1), %s1623_s12, 7 }
  0x4f   : > { %s265_s9 = scalar_lea.sflag (!%p1945_p1), [#allocation3], %s1623_s12  ;;  %s1627_s14 = scalar_lea.vmem (!%p1945_p1), [#allocation2], %s1030_s13 }
  0x53   : > { %1412 = dma.done.wait (%p1946_p4), %s265_s9, 2048  }
  0x54   : > { %1414 = vsyncadd (%p1946_p4), %s265_s9, 4294965248  ;;  %p1947_p6 = scmp.eq.s32.totalorder %s1508_s25, 0 }
  0x56   : > { %1416 = dma.done.wait (%p1947_p6), [#allocation6], 512   ;;  %p1948_p8 = pmov %p1947_p6 }
  0x57   : > { %v1073_v0 = vld [vmem:[%s1627_s14] sm:$0xff]   ;;  %v1136_v1 = vld [vmem:[%s1627_s14 + $0x8] sm:$0xff]   ;;  %v1137_v2 = vld [vmem:[%s1627_s14 + $0x10] sm:$0xff]   ;;  %vm375_vm0 = vcmask 261120   ;;  %vm585_vm1 = vcmask 1041409   ;;  %vm587_vm2 = vcmask 1042434  }
  0x58   : > { %1418 = vsyncadd (%p1948_p8), [#allocation6], 4294966784  ;;  %v1074_v3 = vunpack.c.l.bf16 %v1073_v0  ;;  %v1075_v4 = vunpack.c.h.bf16 %v1073_v0  ;;  %v1078_v5 = vunpack.c.l.bf16 %v1136_v1  ;;  %v1079_v6 = vunpack.c.h.bf16 %v1136_v1  ;;  %v1138_v7 = vld [vmem:[%s1627_s14 + $0x18] sm:$0xff]   ;;  %v1139_v8 = vld [vmem:[%s1627_s14 + $0x20] sm:$0xff]   ;;  %s1033_s18 = sshll.u32 %s1623_s12, 4  ;;  %s1070_s26 = sshll.u32 %s1508_s25, 8 }
  0x59   : > { %v1140_v9 = vld [vmem:[%s1627_s14 + $0x28] sm:$0xff]   ;;  %v1082_v10 = vunpack.c.l.bf16 %v1137_v2  ;;  %v1083_v11 = vunpack.c.h.bf16 %v1137_v2  ;;  %v1086_v12 = vunpack.c.l.bf16 %v1138_v7  ;;  %v1087_v13 = vunpack.c.h.bf16 %v1138_v7  ;;  %v1141_v14 = vld [vmem:[%s1627_s14 + $0x30] sm:$0xff]   ;;  %v1142_v15 = vld [vmem:[%s1627_s14 + $0x38] sm:$0xff]   ;;  %s302_s20 = scalar_lea.vmem [#allocation8], %s1033_s18  ;;  %s309_s8 = scalar_lea.vmem [#allocation9], %s1033_s18 }
  0x5a   : > { %v1646_v16 = vld [vmem:[%s1627_s14 + $0x40] sm:$0xff]   ;;  %v1090_v17 = vunpack.c.l.bf16 %v1139_v8  ;;  %v1091_v18 = vunpack.c.h.bf16 %v1139_v8  ;;  %v1094_v19 = vunpack.c.l.bf16 %v1140_v9  ;;  %v1095_v20 = vunpack.c.h.bf16 %v1140_v9  ;;  %s881_s16 = sshll.u32 %s302_s20, 4  ;;  %s897_s10 = sshll.u32 %s309_s8, 4  ;;  %s1836_s16 = int_to_ptr.vmem [resolvable:$true] %s881_s16  ;;  %s1838_s10 = int_to_ptr.vmem [resolvable:$true] %s897_s10 }
  0x5b   : > { %v1098_v21 = vunpack.c.l.bf16 %v1141_v14  ;;  %v1099_v22 = vunpack.c.h.bf16 %v1141_v14  ;;  %v1102_v23 = vunpack.c.l.bf16 %v1142_v15  ;;  %v1103_v24 = vunpack.c.h.bf16 %v1142_v15  ;;  %s1845_s13 = scalar_lea.hbm %s1929_s5, %s1070_s26  ;;  %s1852_s27 = scalar_lea.hbm %s1930_s6, %s1070_s26 }
  0x5c   : > { %v1106_v25 = vunpack.c.l.bf16 %v1646_v16  ;;  %v1107_v26 = vunpack.c.h.bf16 %v1646_v16  ;;  %v1651_v27 = vsel %vm375_vm0, %v1074_v3, 0.0  ;;  %v1654_v28 = vsel %vm375_vm0, %v1075_v4, 0.0  ;;  %s863_s29 = scalar_lea.sflag [#allocation4], %s1623_s12  ;;  %s1343_s15 = scalar_lea.vmem %s1836_s16, 256 }
  0x5d   : > { %v378_v29 = vadd.f32 %v1654_v28, %v1651_v27  ;;  %v1659_v30 = vsel %vm375_vm0, %v1078_v5, 0.0  ;;  %v1662_v31 = vsel %vm375_vm0, %v1079_v6, 0.0  ;;  %v1665_v32 = vsel %vm375_vm0, %v1082_v10, 0.0  ;;  %p1344_p5 = scmp.ne.s32.totalorder %s1836_s16, %s1343_s15  ;;  %p1949_p2 = scmp.ne.s32.totalorder %s1941_s30, 0 }
  0x5e   : > { %v387_v33 = vadd.f32 %v1662_v31, %v1659_v30  ;;  %v1670_v34 = vsel %vm375_vm0, %v1083_v11, 0.0  ;;  %v1673_v35 = vsel %vm375_vm0, %v1086_v12, 0.0  ;;  %v1676_v36 = vsel %vm375_vm0, %v1087_v13, 0.0  ;;  %s1448_s17 = smov [#allocation8]  }
  0x5f   : > { %v379_v37 = vrot.slane %v378_v29, 4  ;;  %v396_v38 = vadd.f32 %v1670_v34, %v1665_v32  ;;  %v405_v39 = vadd.f32 %v1676_v36, %v1673_v35  ;;  %v1683_v40 = vsel %vm375_vm0, %v1090_v17, 0.0  ;;  %p1345_p7 = pnand %p1344_p5, %p1949_p2  ;;  %s1347_s18 = sshll.u32 %s1448_s17, 4  ;;  %s1348_s18 = int_to_ptr.vmem [resolvable:$false] %s1347_s18 }
  0x60   : > { %v388_v41 = vrot.slane %v387_v33, 4  ;;  %v1686_v42 = vsel %vm375_vm0, %v1091_v18, 0.0  ;;  %v1689_v43 = vsel %vm375_vm0, %v1094_v19, 0.0  ;;  %v1692_v44 = vsel %vm375_vm0, %v1095_v20, 0.0  ;;  %s1349_s11 = scalar_lea.vmem %s1348_s18, 512  ;;  %p1350_p13 = scmp.lt.s32.totalorder %s1836_s16, %s1348_s18 }
  0x61   : > { %v380_v45 = vadd.f32 %v379_v37, %v378_v29  ;;  %v397_v46 = vrot.slane %v396_v38, 4  ;;  %v406_v47 = vrot.slane %v405_v39, 4  ;;  %v414_v48 = vadd.f32 %v1686_v42, %v1683_v40  ;;  %p1346_p12 = pneg %p1345_p7  ;;  %p1351_p0 = scmp.lt.s32.totalorder %s1349_s11, %s1343_s15 }
  0x62   : > { %v389_v49 = vadd.f32 %v388_v41, %v387_v33  ;;  %v423_v50 = vadd.f32 %v1692_v44, %v1689_v43  ;;  %v1699_v51 = vsel %vm375_vm0, %v1098_v21, 0.0  ;;  %v1702_v52 = vsel %vm375_vm0, %v1099_v22, 0.0 }
  0x63   : > { %v381_v53 = vrot.slane %v380_v45, 2  ;;  %v398_v54 = vadd.f32 %v397_v46, %v396_v38  ;;  %v407_v55 = vadd.f32 %v406_v47, %v405_v39  ;;  %v415_v56 = vrot.slane %v414_v48, 4  ;;  %p1352_p10 = por %p1351_p0, %p1350_p13 }
  0x64   : > { %v390_v57 = vrot.slane %v389_v49, 2  ;;  %v424_v58 = vrot.slane %v423_v50, 4  ;;  %v432_v59 = vadd.f32 %v1702_v52, %v1699_v51  ;;  %v1707_v60 = vsel %vm375_vm0, %v1102_v23, 0.0 }
  0x65   : > { %v382_v61 = vadd.f32 %v381_v53, %v380_v45  ;;  %v399_v62 = vrot.slane %v398_v54, 2  ;;  %v408_v63 = vrot.slane %v407_v55, 2  ;;  %v416_v0 = vadd.f32 %v415_v56, %v414_v48  ;;  %v1144_v53 = vld [vmem:[%s1627_s14 + $0x48] sm:$0xff]   ;;  %p1353_p3 = pnand %p1352_p10, %p1346_p12 }
  0x66   : > { %v391_v1 = vadd.f32 %v390_v57, %v389_v49  ;;  %v425_v2 = vadd.f32 %v424_v58, %v423_v50  ;;  %v433_v3 = vrot.slane %v432_v59, 4  ;;  %v1710_v4 = vsel %vm375_vm0, %v1103_v24, 0.0 }
  0x67   : > { %v383_v5 = vrot.slane %v382_v61, 1  ;;  %v400_v6 = vadd.f32 %v399_v62, %v398_v54  ;;  %v409_v7 = vadd.f32 %v408_v63, %v407_v55  ;;  %v417_v8 = vrot.slane %v416_v0, 2 }
  0x68   : > { %v392_v9 = vrot.slane %v391_v1, 1  ;;  %v426_v10 = vrot.slane %v425_v2, 2  ;;  %v434_v11 = vadd.f32 %v433_v3, %v432_v59  ;;  %v441_v12 = vadd.f32 %v1710_v4, %v1707_v60 }
  0x69   : > { %vm589_vm3 = vcmask 1043459   ;;  %v384_v13 = vadd.f32 %v383_v5, %v382_v61  ;;  %v401_v14 = vrot.slane %v400_v6, 1  ;;  %v410_v15 = vrot.slane %v409_v7, 1 }
  0x6a   : > { %v418_v17 = vadd.f32 %v417_v8, %v416_v0  ;;  %vm591_vm4 = vcmask 1044484   ;;  %v393_v18 = vadd.f32 %v392_v9, %v391_v1  ;;  %v427_v19 = vadd.f32 %v426_v10, %v425_v2  ;;  %v1145_v1 = vld [vmem:[%s1627_s14 + $0x50] sm:$0xff]  }
  0x6b   : > { %v435_v20 = vrot.slane %v434_v11, 2  ;;  %v442_v21 = vrot.slane %v441_v12, 4  ;;  %vm593_vm5 = vcmask 1045509   ;;  %v402_v22 = vadd.f32 %v401_v14, %v400_v6 }
  0x6c   : > { %v411_v23 = vadd.f32 %v410_v15, %v409_v7  ;;  %v419_v24 = vrot.slane %v418_v17, 1  ;;  %v1717_v29 = vsel %vm375_vm0, %v1106_v25, 0.0  ;;  %vm595_vm6 = vcmask 1046534  }
  0x6d   : > { %v428_v33 = vrot.slane %v427_v19, 1  ;;  %v436_v37 = vadd.f32 %v435_v20, %v434_v11  ;;  %v443_v38 = vadd.f32 %v442_v21, %v441_v12  ;;  %v1722_v39 = vsel %vm375_vm0, %v1107_v26, 0.0  ;;  %v1147_v11 = vld [vmem:[%s1627_s14 + $0x60] sm:$0xff]   ;;  %v1149_v20 = vld [vmem:[%s1627_s14 + $0x70] sm:$0xff]  }
  0x6e   : > { %v420_v41 = vadd.f32 %v419_v24, %v418_v17  ;;  %v450_v45 = vadd.f32 %v1722_v39, %v1717_v29  ;;  %v521_v46 = vmul.f32 0.0625, %v384_v13  ;;  %v522_v47 = vmul.f32 0.0625, %v393_v18  ;;  %v1150_v24 = vld [vmem:[%s1627_s14 + $0x78] sm:$0xff]  }
  0x6f   : > { %vm597_vm7 = vcmask 1047559   ;;  %v429_v48 = vadd.f32 %v428_v33, %v427_v19  ;;  %v437_v49 = vrot.slane %v436_v37, 1  ;;  %v444_v25 = vrot.slane %v443_v38, 2 }
  0x70   : > { %v523_v50 = vmul.f32 0.0625, %v402_v22  ;;  %v451_v54 = vrot.slane %v450_v45, 4  ;;  %v524_v55 = vmul.f32 0.0625, %v411_v23  ;;  %v525_v56 = vmul.f32 0.0625, %v420_v41 }
  0x71   : > { %v537_v16 = vadd.f32 %v1659_v30, %v1651_v27  ;;  %v438_v26 = vadd.f32 %v437_v49, %v436_v37  ;;  %v445_v57 = vadd.f32 %v444_v25, %v443_v38  ;;  %v526_v58 = vmul.f32 0.0625, %v429_v48 }
  0x72   : > { %v552_v59 = vadd.f32 %v1662_v31, %v1654_v28  ;;  %v452_v61 = vadd.f32 %v451_v54, %v450_v45  ;;  %v586_v63 = vsel %vm585_vm1, %v522_v47, %v521_v46  ;;  %v1110_v0 = vunpack.c.l.bf16 %v1144_v53 }
  0x73   : > { %v538_v62 = vadd.f32 %v537_v16, %v1665_v32  ;;  %v446_v2 = vrot.slane %v445_v57, 1  ;;  %v527_v3 = vmul.f32 0.0625, %v438_v26  ;;  %v588_v27 = vsel %vm587_vm2, %v523_v50, %v586_v63  ;;  %v1146_v32 = vld [vmem:[%s1627_s14 + $0x58] sm:$0xff]  }
  0x74   : > { %v553_v5 = vadd.f32 %v552_v59, %v1670_v34  ;;  %v453_v30 = vrot.slane %v452_v61, 2  ;;  %v590_v28 = vsel %vm589_vm3, %v524_v55, %v588_v27  ;;  %v1111_v31 = vunpack.c.h.bf16 %v1144_v53 }
  0x75   : > { %v539_v6 = vadd.f32 %v538_v62, %v1673_v35  ;;  %v447_v7 = vadd.f32 %v446_v2, %v445_v57  ;;  %v592_v9 = vsel %vm591_vm4, %v525_v56, %v590_v28  ;;  %v1114_v10 = vunpack.c.l.bf16 %v1145_v1  ;;  %v1148_v35 = vld [vmem:[%s1627_s14 + $0x68] sm:$0xff]  }
  0x76   : > { %v554_v8 = vadd.f32 %v553_v5, %v1676_v36  ;;  %v454_v34 = vadd.f32 %v453_v30, %v452_v61  ;;  %v594_v13 = vsel %vm593_vm5, %v526_v58, %v592_v9  ;;  %v1115_v14 = vunpack.c.h.bf16 %v1145_v1 }
  0x77   : > { %v540_v12 = vadd.f32 %v539_v6, %v1683_v40  ;;  %v528_v15 = vmul.f32 0.0625, %v447_v7  ;;  %v596_v18 = vsel %vm595_vm6, %v527_v3, %v594_v13  ;;  %v1118_v19 = vunpack.c.l.bf16 %v1146_v32 }
  0x78   : > { %v555_v17 = vadd.f32 %v554_v8, %v1686_v42  ;;  %v1119_v21 = vunpack.c.h.bf16 %v1146_v32  ;;  %v1122_v22 = vunpack.c.l.bf16 %v1147_v11  ;;  %v1123_v23 = vunpack.c.h.bf16 %v1147_v11 }
  0x79   : > { %v541_v36 = vadd.f32 %v540_v12, %v1689_v43  ;;  %v1752_v40 = vsel %vm597_vm7, %v528_v15, %v596_v18  ;;  %v1126_v37 = vunpack.c.l.bf16 %v1148_v35  ;;  %v1127_v38 = vunpack.c.h.bf16 %v1148_v35 }
  0x7a   : > { %v556_v33 = vadd.f32 %v555_v17, %v1692_v44  ;;  %v608_v42 = vsel %vm375_vm0, %v1752_v40, 0.0  ;;  %v1130_v45 = vunpack.c.l.bf16 %v1149_v20  ;;  %v1131_v46 = vunpack.c.h.bf16 %v1149_v20 }
  0x7b   : > { %v542_v41 = vadd.f32 %v541_v36, %v1699_v51  ;;  %609 = vadd.xlane.f32.xlu0 %v608_v42  ;;  %v1134_v47 = vunpack.c.l.bf16 %v1150_v24  ;;  %v1135_v48 = vunpack.c.h.bf16 %v1150_v24  ;;  %v455_v49 = vrot.slane %v454_v34, 1 }
  0x7c   : > { %v557_v43 = vadd.f32 %v556_v33, %v1702_v52  ;;  %v457_v25 = vsel %vm375_vm0, %v1110_v0, 0.0  ;;  %v1761_v50 = vsel %vm375_vm0, %v1111_v31, 0.0  ;;  %v466_v51 = vsel %vm375_vm0, %v1114_v10, 0.0 }
  0x7d   : > { %v543_v44 = vadd.f32 %v542_v41, %v1707_v60  ;;  %v456_v54 = vadd.f32 %v455_v49, %v454_v34  ;;  %v459_v55 = vadd.f32 %v1761_v50, %v457_v25  ;;  %v1767_v52 = vsel %vm375_vm0, %v1115_v14, 0.0 }
  0x7e   : > { %v558_v53 = vadd.f32 %v557_v43, %v1710_v4  ;;  %v468_v16 = vadd.f32 %v1767_v52, %v466_v51  ;;  %v475_v60 = vsel %vm375_vm0, %v1118_v19, 0.0  ;;  %v1773_v26 = vsel %vm375_vm0, %v1119_v21, 0.0 }
  0x7f   : > { %v544_v56 = vadd.f32 %v543_v44, %v1717_v29  ;;  %v460_v58 = vrot.slane %v459_v55, 4  ;;  %v477_v4 = vadd.f32 %v1773_v26, %v475_v60  ;;  %v484_v59 = vsel %vm375_vm0, %v1122_v22, 0.0 }
  0x80   : > { %v1776_v57 = vadd.f32 %v558_v53, %v1722_v39  ;;  %v469_v61 = vrot.slane %v468_v16, 4  ;;  %v1781_v62 = vsel %vm375_vm0, %v1123_v23, 0.0  ;;  %v493_v29 = vsel %vm375_vm0, %v1126_v37, 0.0 }
  0x81   : > { %v1785_v63 = vsel %vm375_vm0, %v1127_v38, 0.0  ;;  %v461_v0 = vadd.f32 %v460_v58, %v459_v55  ;;  %v478_v1 = vrot.slane %v477_v4, 4  ;;  %v486_v2 = vadd.f32 %v1781_v62, %v484_v59 }
  0x82   : > { %v495_v39 = vadd.f32 %v1785_v63, %v493_v29  ;;  %v470_v3 = vadd.f32 %v469_v61, %v468_v16  ;;  %v502_v5 = vsel %vm375_vm0, %v1130_v45, 0.0  ;;  %v1791_v27 = vsel %vm375_vm0, %v1131_v46, 0.0 }
  0x83   : > { %v511_v30 = vsel %vm375_vm0, %v1134_v47, 0.0  ;;  %v462_v6 = vrot.slane %v461_v0, 2  ;;  %v479_v28 = vadd.f32 %v478_v1, %v477_v4  ;;  %v487_v31 = vrot.slane %v486_v2, 4 }
  0x84   : > { %v496_v32 = vrot.slane %v495_v39, 4  ;;  %v471_v7 = vrot.slane %v470_v3, 2  ;;  %v504_v8 = vadd.f32 %v1791_v27, %v502_v5  ;;  %v1796_v9 = vsel %vm375_vm0, %v1135_v48, 0.0 }
  0x85   : > { %v529_v10 = vmul.f32 0.0625, %v456_v54  ;;  %v463_v11 = vadd.f32 %v462_v6, %v461_v0  ;;  %v480_v34 = vrot.slane %v479_v28, 2  ;;  %v488_v12 = vadd.f32 %v487_v31, %v486_v2 }
  0x86   : > { %v497_v13 = vadd.f32 %v496_v32, %v495_v39  ;;  %v472_v14 = vadd.f32 %v471_v7, %v470_v3  ;;  %v505_v35 = vrot.slane %v504_v8, 4  ;;  %v513_v15 = vadd.f32 %v1796_v9, %v511_v30 }
  0x87   : > { %v545_v17 = vadd.f32 %v544_v56, %v457_v25  ;;  %v464_v18 = vrot.slane %v463_v11, 1  ;;  %v481_v19 = vadd.f32 %v480_v34, %v479_v28  ;;  %v489_v20 = vrot.slane %v488_v12, 2 }
  0x88   : > { %v498_v36 = vrot.slane %v497_v13, 2  ;;  %v473_v21 = vrot.slane %v472_v14, 1  ;;  %v506_v22 = vadd.f32 %v505_v35, %v504_v8  ;;  %v514_v23 = vrot.slane %v513_v15, 4 }
  0x89   : > { %v546_v24 = vadd.f32 %v545_v17, %v466_v51  ;;  %v465_v33 = vadd.f32 %v464_v18, %v463_v11  ;;  %v482_v37 = vrot.slane %v481_v19, 1  ;;  %v490_v38 = vadd.f32 %v489_v20, %v488_v12 }
  0x8a   : > { %v499_v41 = vadd.f32 %v498_v36, %v497_v13  ;;  %v474_v42 = vadd.f32 %v473_v21, %v472_v14  ;;  %v507_v45 = vrot.slane %v506_v22, 2  ;;  %v515_v46 = vadd.f32 %v514_v23, %v513_v15 }
  0x8b   : > { %v547_v43 = vadd.f32 %v546_v24, %v475_v60  ;;  %v483_v47 = vadd.f32 %v482_v37, %v481_v19  ;;  %v491_v48 = vrot.slane %v490_v38, 1  ;;  %v530_v44 = vmul.f32 0.0625, %v465_v33 }
  0x8c   : > { %v500_v49 = vrot.slane %v499_v41, 1  ;;  %v508_v25 = vadd.f32 %v507_v45, %v506_v22  ;;  %v516_v53 = vrot.slane %v515_v46, 2  ;;  %v531_v54 = vmul.f32 0.0625, %v474_v42 }
  0x8d   : > { %v548_v55 = vadd.f32 %v547_v43, %v484_v59  ;;  %v492_v56 = vadd.f32 %v491_v48, %v490_v38  ;;  %v532_v58 = vmul.f32 0.0625, %v483_v47  ;;  %v599_v51 = vsel %vm585_vm1, %v530_v44, %v529_v10  ;;  %v1252_v43 = vld [vmem:[#allocation7 + $0x8] sm:$0xff]   ;;  %v1253_v47 = vld [vmem:[#allocation5] sm:$0xff]   ;;  %v1254_v48 = vld [vmem:[#allocation7] sm:$0xff]  }
  0x8e   : > { %v501_v16 = vadd.f32 %v500_v49, %v499_v41  ;;  %v509_v4 = vrot.slane %v508_v25, 1  ;;  %v517_v61 = vadd.f32 %v516_v53, %v515_v46  ;;  %v600_v0 = vsel %vm587_vm2, %v531_v54, %v599_v51  ;;  %v1251_v46 = vld [vmem:[#allocation5 + $0x8] sm:$0xff]   ;;  %1167 = vmatprep.subr.bf16.mxu1 %v1252_v43 }
  0x8f   : > { %v549_v1 = vadd.f32 %v548_v55, %v493_v29  ;;  %v533_v2 = vmul.f32 0.0625, %v492_v56  ;;  %v601_v39 = vsel %vm589_vm3, %v532_v58, %v600_v0  ;;  %v560_v3 = vadd.f32 %v1776_v57, %v1761_v50  ;;  %1159 = vmatprep.subr.bf16.mxu0 %v1251_v46  ;;  %1168 = vmatpush3.bf16.msra.mxu1 %v1252_v43 }
  0x90   : > { %v534_v60 = vmul.f32 0.0625, %v501_v16  ;;  %v510_v6 = vadd.f32 %v509_v4, %v508_v25  ;;  %v518_v28 = vrot.slane %v517_v61, 1  ;;  %1160 = vmatpush3.bf16.msra.mxu0 %v1251_v46  ;;  %1169 = vmatprep.subr.bf16.mxu1 %v1254_v48  ;;  %vm772_vm8 = vcmask 257024  }
  0x91   : > { %v550_v59 = vadd.f32 %v549_v1, %v502_v5  ;;  %v602_v31 = vsel %vm591_vm4, %v533_v2, %v601_v39  ;;  %v561_v32 = vadd.f32 %v560_v3, %v1767_v52  ;;  %1161 = vmatprep.subr.bf16.mxu0 %v1253_v47  ;;  %v1035_v2 = vld [vmem:[%s1927_s3] ss:$0 sm:$0xff] }
  0x92   : > { %v519_v7 = vadd.f32 %v518_v28, %v517_v61  ;;  %v535_v8 = vmul.f32 0.0625, %v510_v6  ;;  %v603_v10 = vsel %vm593_vm5, %v534_v60, %v602_v31  ;;  %v1036_v28 = vld [vmem:[%s1928_s4] ss:$0 sm:$0xff] }
  0x93   : > { %v551_v11 = vadd.f32 %v550_v59, %v511_v30  ;;  %v562_v29 = vadd.f32 %v561_v32, %v1773_v26  ;;  %1170 = vmatpush3.bf16.msra.mxu1 %v1254_v48 }
  0x94   : > { %v536_v34 = vmul.f32 0.0625, %v519_v7  ;;  %v604_v12 = vsel %vm595_vm6, %v535_v8, %v603_v10  ;;  %1162 = vmatpush3.bf16.msra.mxu0 %v1253_v47 }
  0x95   : > { %v567_v13 = vmul.f32 0.0625, %v551_v11  ;;  %v563_v50 = vadd.f32 %v562_v29, %v1781_v62 }
  0x96   : > { %v605_v57 = vsel %vm597_vm7, %v536_v34, %v604_v12 }
  0x97   : > { %v614_v5 = vsel %vm375_vm0, %v567_v13, 0.0  ;;  %v611_v14 = vsel %vm375_vm0, %v605_v57, 0.0  ;;  %v564_v52 = vadd.f32 %v563_v50, %v1785_v63 }
  0x98   : > { %615 = vadd.xlane.f32.xlu1 %v614_v5  ;;  %612 = vadd.xlane.f32.xlu0 %v611_v14 }
  0x99   : > { %v565_v30 = vadd.f32 %v564_v52, %v1791_v27 }
  0x9b   : > { %v566_v26 = vadd.f32 %v565_v30, %v1796_v9 }
  0x9d   : > { %v568_v35 = vmul.f32 0.0625, %v566_v26 }
  0x9f   : > { %v617_v15 = vsel %vm375_vm0, %v568_v35, 0.0 }
  0xa0   : > { %618 = vadd.xlane.f32.xlu1 %v617_v15 }
 0x104   : > { %v610_v17 = vpop.xlane.xlu0 %609 }
 0x105   : > { %v621_v62 = vmul.f32 0.03125, %v610_v17 }
 0x107   : > { %v625_v18 = vsub.f32 %v1752_v40, %v621_v62 }
 0x109   : > { %v629_v19 = vmul.f32 %v625_v18, %v625_v18 }
 0x10b   : > { %v633_v20 = vsel %vm375_vm0, %v629_v19, 0.0 }
 0x10c   : > { %634 = vadd.xlane.f32.xlu0 %v633_v20 }
 0x121   : > { %v616_v36 = vpop.xlane.xlu1 %615  ;;  %v613_v21 = vpop.xlane.xlu0 %612 }
 0x122   : > { %v623_v63 = vmul.f32 0.03125, %v616_v36  ;;  %v622_v22 = vmul.f32 0.03125, %v613_v21 }
 0x124   : > { %v627_v23 = vsub.f32 %v567_v13, %v623_v63  ;;  %v626_v27 = vsub.f32 %v605_v57, %v622_v22 }
 0x126   : > { %v631_v24 = vmul.f32 %v627_v23, %v627_v23  ;;  %v630_v9 = vmul.f32 %v626_v27, %v626_v27 }
 0x128   : > { %v639_v33 = vsel %vm375_vm0, %v631_v24, 0.0  ;;  %v636_v37 = vsel %vm375_vm0, %v630_v9, 0.0 }
 0x129   : > { %640 = vadd.xlane.f32.xlu0 %v639_v33  ;;  %637 = vadd.xlane.f32.xlu1 %v636_v37  ;;  %v619_v38 = vpop.xlane.xlu1 %618 }
 0x12a   : > { %v624_v40 = vmul.f32 0.03125, %v619_v38 }
 0x12c   : > { %v628_v41 = vsub.f32 %v568_v35, %v624_v40 }
 0x12e   : > { %v632_v42 = vmul.f32 %v628_v41, %v628_v41 }
 0x130   : > { %v642_v45 = vsel %vm375_vm0, %v632_v42, 0.0 }
 0x131   : > { %643 = vadd.xlane.f32.xlu1 %v642_v45 }
 0x195   : > { %v635_v49 = vpop.xlane.xlu0 %634 }
 0x196   : > { %v645_v44 = vmul.f32 0.03125, %v635_v49 }
 0x198   : > { %v649_v25 = vadd.f32 1e-05, %v645_v44 }
 0x19a   : > { %1255 = vrsqrt.f32 %v649_v25 }
 0x1a7   : > { %v1256_v0 = vpop.eup %1255 }
 0x1a8   : > { %v657_v1 = vmul.f32 %v1256_v0, %v625_v18 }
 0x1aa   : > { %v668_v3 = vmul.f32 %v1035_v2, %v657_v1 }
 0x1ac   : > { %v679_v31 = vadd.f32 %v1036_v28, %v668_v3 }
 0x1b2   : > { %v641_v53 = vpop.xlane.xlu0 %640  ;;  %v638_v54 = vpop.xlane.xlu1 %637 }
 0x1b3   : > { %v647_v55 = vmul.f32 0.03125, %v641_v53  ;;  %v646_v56 = vmul.f32 0.03125, %v638_v54 }
 0x1b5   : > { %v650_v16 = vadd.f32 1e-05, %v646_v56  ;;  %v651_v58 = vadd.f32 1e-05, %v647_v55 }
 0x1b7   : > { %1257 = vrsqrt.f32 %v650_v16 }
 0x1b8   : > { %1259 = vrsqrt.f32 %v651_v58 }
 0x1ba   : > { %v644_v51 = vpop.xlane.xlu1 %643 }
 0x1bb   : > { %v648_v4 = vmul.f32 0.03125, %v644_v51 }
 0x1bd   : > { %v652_v61 = vadd.f32 1e-05, %v648_v4 }
 0x1bf   : > { %1261 = vrsqrt.f32 %v652_v61 }
 0x1c4   : > { %v1258_v60 = vpop.eup %1257 }
 0x1c5   : > { %v658_v39 = vmul.f32 %v1258_v60, %v626_v27  ;;  %v1260_v6 = vpop.eup %1259 }
 0x1c6   : > { %v659_v7 = vmul.f32 %v1260_v6, %v627_v23 }
 0x1c7   : > { %v669_v59 = vmul.f32 %v1035_v2, %v658_v39 }
 0x1c8   : > { %v670_v29 = vmul.f32 %v1035_v2, %v659_v7 }
 0x1c9   : > { %v680_v32 = vadd.f32 %v1036_v28, %v669_v59 }
 0x1ca   : > { %v681_v12 = vadd.f32 %v1036_v28, %v670_v29 }
 0x1cb   : > { %v683_v8 = vpack.c.bf16 %v680_v32, %v679_v31 }
 0x1cc   : > { %v1262_v10 = vpop.eup %1261 }
 0x1cd   : > { %1163 = vmatprep.mubr.msk.bf16.mxu0 %vm375_vm0, %v683_v8  ;;  %1171 = vmatprep.mubr.msk.bf16.mxu1 %vm375_vm0, %v683_v8  ;;  %v660_v11 = vmul.f32 %v1262_v10, %v628_v41 }
 0x1cf   : > { %v671_v34 = vmul.f32 %v1035_v2, %v660_v11 }
 0x1d1   : > { %v682_v13 = vadd.f32 %v1036_v28, %v671_v34 }
 0x1d3   : > { %v684_v50 = vpack.c.bf16 %v682_v13, %v681_v12 }
 0x1d5   : > { %1164 = vmatmul.mubr.msk.bf16.vlgmr.msra.gmra.mxu0 %vm375_vm0, %v684_v50  ;;  %1172 = vmatmul.mubr.msk.bf16.vlgmr.msra.gmra.mxu1 %vm375_vm0, %v684_v50 }
 0x295   : > { %v1165_v57 = vpop.f32.mrf.mxu0  ;;  %v1173_v5 = vpop.f32.mrf.mxu1 }
 0x296   : > { %v1064_v14 = vpack.c.bf16 %v1165_v57, %v1165_v57  ;;  %v1068_v52 = vpack.c.bf16 %v1173_v5, %v1173_v5 }
 0x297   : > { %v741_v30 = vpop.f32.mrf.mxu0  ;;  %v827_v26 = vpop.f32.mrf.mxu1 }
 0x298   : > { %775 = vst.msk [vmem:[%s302_s20 + $0x8] sm:$0xf] %vm772_vm8, %v1064_v14  ;;  %860 = vst.msk [vmem:[%s309_s8 + $0x8] sm:$0xf] %vm772_vm8, %v1068_v52  ;;  %v1062_v35 = vpack.c.bf16 %v741_v30, %v741_v30  ;;  %v1066_v15 = vpack.c.bf16 %v827_v26, %v827_v26 }
 0x299   : > { %v1166_v17 = vpop.f32.mrf.mxu0  ;;  %v1174_v62 = vpop.f32.mrf.mxu1 }
 0x29a   : > { %773 = vst.msk [vmem:[%s302_s20] sm:$0xf] %vm772_vm8, %v1062_v35  ;;  %858 = vst.msk [vmem:[%s309_s8] sm:$0xf] %vm772_vm8, %v1066_v15  ;;  %v1065_v18 = vpack.c.bf16 %v1166_v17, %v1166_v17  ;;  %v1069_v19 = vpack.c.bf16 %v1174_v62, %v1174_v62 }
 0x29b   : > { %v744_v20 = vpop.f32.mrf.mxu0  ;;  %v830_v36 = vpop.f32.mrf.mxu1 }
 0x29c   : > { %776 = vst.msk [vmem:[%s302_s20 + $0xc] sm:$0xf] %vm772_vm8, %v1065_v18  ;;  %861 = vst.msk [vmem:[%s309_s8 + $0xc] sm:$0xf] %vm772_vm8, %v1069_v19  ;;  %v1063_v21 = vpack.c.bf16 %v744_v20, %v744_v20  ;;  %v1067_v63 = vpack.c.bf16 %v830_v36, %v830_v36 }
 0x29e   : > { %774 = vst.msk [vmem:[%s302_s20 + $0x4] sm:$0xf] %vm772_vm8, %v1063_v21  ;;  %859 = vst.msk [vmem:[%s309_s8 + $0x4] sm:$0xf] %vm772_vm8, %v1067_v63 }
 0x29f   : > { %1356 = shalt.err (!%p1353_p3)
}
 0x2a0   : > { %s1357_s20 = scalar_lea.hbm %s1845_s13, 256  ;;  %s1361_s25 = scalar_lea.hbm %s1929_s5, 512 }
 0x2a1   : > { %p1358_p11 = scmp.ne.s32.totalorder %s1845_s13, %s1357_s20  ;;  %p1362_p4 = scmp.lt.s32.totalorder %s1845_s13, %s1929_s5 }
 0x2a2   : > { %p1363_p6 = scmp.lt.s32.totalorder %s1361_s25, %s1357_s20 }
 0x2a3   : > { %p1359_p9 = pnand %p1358_p11, %p1949_p2 }
 0x2a4   : > { %p1364_p8 = por %p1363_p6, %p1362_p4 }
 0x2a5   : > { %p1360_p1 = pneg %p1359_p9 }
 0x2a7   : > { %p1365_p5 = pnand %p1364_p8, %p1360_p1 }
 0x2a9   : > { %1368 = shalt.err (!%p1365_p5)
}
 0x2aa   : > { %s1449_s15 = smov 64   ;;  %s1450_s17 = smov 4  }
 0x2ab   : > { %1185 = dma.vmem_to_hbm [thread:$0]  (%p1949_p2), %s1836_s16, 256, %s1845_s13, %s863_s29, %s1449_s15, %s1449_s15, %s1450_s17  }
 0x2ac   : > { %s868_s18 = scalar_lea.sflag [#allocation10], %s1623_s12  ;;  %s1369_s11 = scalar_lea.vmem %s1838_s10, 256 }
 0x2ad   : > { %p1370_p7 = scmp.ne.s32.totalorder %s1838_s10, %s1369_s11  ;;  %s1451_s20 = smov [#allocation9]  }
 0x2ae   : > { %s1373_s8 = sshll.u32 %s1451_s20, 4  ;;  %s1374_s8 = int_to_ptr.vmem [resolvable:$false] %s1373_s8 }
 0x2af   : > { %p1371_p12 = pnand %p1370_p7, %p1949_p2  ;;  %s1375_s26 = scalar_lea.vmem %s1374_s8, 512 }
 0x2b0   : > { %p1376_p0 = scmp.lt.s32.totalorder %s1838_s10, %s1374_s8  ;;  %p1377_p10 = scmp.lt.s32.totalorder %s1375_s26, %s1369_s11 }
 0x2b1   : > { %p1372_p13 = pneg %p1371_p12 }
 0x2b2   : > { %p1378_p3 = por %p1377_p10, %p1376_p0 }
 0x2b4   : > { %p1379_p11 = pnand %p1378_p3, %p1372_p13 }
 0x2b6   : > { %1382 = shalt.err (!%p1379_p11)
}
 0x2b7   : > { %s1383_s16 = scalar_lea.hbm %s1852_s27, 256  ;;  %s1387_s29 = scalar_lea.hbm %s1930_s6, 512 }
 0x2b8   : > { %p1384_p9 = scmp.ne.s32.totalorder %s1852_s27, %s1383_s16  ;;  %p1388_p6 = scmp.lt.s32.totalorder %s1852_s27, %s1930_s6 }
 0x2b9   : > { %p1389_p8 = scmp.lt.s32.totalorder %s1387_s29, %s1383_s16 }
 0x2ba   : > { %p1385_p1 = pnand %p1384_p9, %p1949_p2 }
 0x2bb   : > { %p1390_p5 = por %p1389_p8, %p1388_p6 }
 0x2bc   : > { %p1386_p4 = pneg %p1385_p1 }
 0x2be   : > { %p1391_p7 = pnand %p1390_p5, %p1386_p4 }
 0x2c0   : > { %1394 = shalt.err (!%p1391_p7)
}
 0x2c1   : > { %1186 = dma.vmem_to_hbm [thread:$0]  (%p1949_p2), %s1838_s10, 256, %s1852_s27, %s868_s18, %s1449_s15, %s1449_s15, %s1450_s17  }
 0x2c2 PF: > { %s912_s14 = sand.u32 1, %s1429_s21   ;;  %p1950_p12 = scmp.ne.s32.totalorder %s1938_s28, 0 }
 0x2c3   : > { %p1951_p13 = scmp.ge.s32.totalorder %s1441_s24, 2  ;;  %s913_s11 = scalar_lea.sflag [#allocation4], %s912_s14 }
 0x2c5   : > { %p1201_p0 = pnand %p1951_p13, %p1950_p12 }
 0x2c7   : > { %p1202_p10 = pneg %p1201_p0 }
 0x2c9   : > { %1420 = dma.done.wait (%p1202_p10), %s913_s11, 256  }
 0x2ca   : > { %1422 = vsyncadd (%p1202_p10), %s913_s11, 4294967040  ;;  %s922_s20 = scalar_lea.sflag [#allocation10], %s912_s14 }
 0x2cb   : > { %1424 = dma.done.wait (%p1202_p10), %s922_s20, 256  }
 0x2cc   : > { %1426 = vsyncadd (%p1202_p10), %s922_s20, 4294967040  ;;  %p24_p2 = scmp.ge.s32.totalorder %s1565_s19, 4   ;;  %s1952_s21 = smov %s1433_s22 }
 0x2cd   : > { %s1953_s22 = smov %s1437_s23  ;;  %s1954_s23 = smov %s1581_s7 }
 0x2ce   : > { %s1955_s24 = smov %s1565_s19  ;;  %26 = sbr.rel (!%p24_p2) target bundleno = 8 (0x8), region = 110 }
 0x2d3   :  { %927 = vsyncpa [#allocation3], 1 }
 0x2d4   :  { %929 = vsyncpa [#allocation3 + $0x1], 1 }
 0x2d5   :  { %930 = vsyncpa [#allocation6], 1 }
 0x2d6   :  { %931 = vsyncpa [#allocation4], 1 }
 0x2d7   :  { %933 = vsyncpa [#allocation4 + $0x1], 1 }
 0x2d8   :  { %934 = vsyncpa [#allocation10], 1 }
 0x2d9   :  { %936 = vsyncpa [#allocation10 + $0x1], 1 }

</bundles_post_ra>
